<compile_context>
chip_gen: v5e
topology: v5e:2x2
jax: 0.10.0
libtpu: 0.0.40
codegen_flags: <defaults>
</compile_context>

<pallas_src>
import math
import jax
import jax.numpy as jnp
from jax.experimental import pallas as pl
from jax.experimental.pallas import tpu as pltpu

# ---- model hyperparameters (match HybridDronePolicy.__init__) ---------------
HID = 128            # LSTM hidden size
D_MODEL = 32         # lidar embedding / transformer d_model
N_HEADS = 4
HEAD_DIM = D_MODEL // N_HEADS
FF_DIM = 2048        # TransformerEncoderLayer default dim_feedforward
N_LAYERS = 2
FUSED_DIM = HID + D_MODEL
HEAD_HID = 64
OUT_DIM = 6
OUT_PAD = 128        # lane-dense padded output width
LN_EPS = 1e-5


# ---------------- Kernel 1: single-layer LSTM, final hidden state ------------
def lstm_kernel(x_ref, wih_ref, whh_ref, b_ref, h_out_ref, xproj_ref):
    # x_ref: (T, B, D_state) time-major f32; wih: (D_state, 4H) bf16;
    # whh: (H, 4H) bf16; b: (1, 4H) f32; xproj scratch: (T, B, 4H) f32.
    T, B, D = x_ref.shape

    # Hoist the input projection out of the recurrence: one big bf16 matmul.
    x_flat = x_ref[...].reshape(T * B, D).astype(jnp.bfloat16)
    xproj_ref[...] = jnp.dot(
        x_flat, wih_ref[...], preferred_element_type=jnp.float32
    ).reshape(T, B, 4 * HID)

    # Hoist loop-invariant reads out of the serial loop.
    bias = b_ref[...]
    whh = whh_ref[...]

    def sigmoid_t(z):  # exact: sigmoid(z) = 0.5*tanh(z/2) + 0.5 (tanh -> EUP slot)
        return 0.5 * jnp.tanh(0.5 * z) + 0.5

    def step(t, carry):
        h, c = carry
        gates = (xproj_ref[t]
                 + jnp.dot(h.astype(jnp.bfloat16), whh,
                           preferred_element_type=jnp.float32)
                 + bias)
        i = sigmoid_t(gates[:, 0 * HID:1 * HID])   # PyTorch gate order: i, f, g, o
        f = sigmoid_t(gates[:, 1 * HID:2 * HID])
        g = jnp.tanh(gates[:, 2 * HID:3 * HID])
        o = sigmoid_t(gates[:, 3 * HID:4 * HID])
        c_new = f * c + i * g
        h_new = o * jnp.tanh(c_new)
        return (h_new, c_new)

    h0 = jnp.zeros((B, HID), jnp.float32)
    c0 = jnp.zeros((B, HID), jnp.float32)
    h, _ = jax.lax.fori_loop(0, T, step, (h0, c0))
    h_out_ref[...] = h


# ---------------- Kernel 2: lidar branch + fused output heads ----------------
def _layernorm(x, w, b):
    mu = jnp.mean(x, axis=-1, keepdims=True)
    var = jnp.mean((x - mu) ** 2, axis=-1, keepdims=True)
    return (x - mu) * jax.lax.rsqrt(var + LN_EPS) * w + b


def lidar_heads_kernel(lidar_ref, state_ref,
                       fc_w_ref, fc_b_ref,
                       inproj_w_ref, inproj_b_ref, outproj_w_ref, outproj_b_ref,
                       ln1_w_ref, ln1_b_ref, ln2_w_ref, ln2_b_ref,
                       ffn_w1_ref, ffn_b1_ref, ffn_w2_ref, ffn_b2_ref,
                       w1s_ref, w1l_ref, b1_ref, w2_ref, b2_ref,
                       out_ref):
    # lidar_ref: (B, N, 3) f32 — full batch in one call so every projection /
    # FFN matmul has M = B*N rows instead of N. state_ref: (B, 128) f32.
    B, N, L = lidar_ref.shape
    scale = 1.0 / math.sqrt(HEAD_DIM)

    x_in = lidar_ref[...].reshape(B * N, L).astype(jnp.bfloat16)
    x = jnp.dot(x_in, fc_w_ref[...],
                preferred_element_type=jnp.float32) + fc_b_ref[...]      # (B*N, 32) f32

    for l in range(N_LAYERS):
        # ---- multi-head self-attention (post-norm encoder layer) ----
        qkv = jnp.dot(x.astype(jnp.bfloat16), inproj_w_ref[l],
                      preferred_element_type=jnp.float32) + inproj_b_ref[l]  # (B*N, 96)
        qkv3 = qkv.reshape(B, N, 3 * D_MODEL)
        heads = []
        for h in range(N_HEADS):
            qh = qkv3[:, :, h * HEAD_DIM:(h + 1) * HEAD_DIM] * scale
            kh = qkv3[:, :, D_MODEL + h * HEAD_DIM:D_MODEL + (h + 1) * HEAD_DIM]
            vh = qkv3[:, :, 2 * D_MODEL + h * HEAD_DIM:2 * D_MODEL + (h + 1) * HEAD_DIM]
            # batched dot_general over the batch dim; no explicit transpose.
            s = jnp.einsum('bnd,bmd->bnm', qh, kh,
                           preferred_element_type=jnp.float32)            # (B, N, N)
            s = s - jnp.max(s, axis=-1, keepdims=True)
            p = jnp.exp(s)
            p = p / jnp.sum(p, axis=-1, keepdims=True)
            heads.append(jnp.einsum('bnm,bmd->bnd', p, vh,
                                    preferred_element_type=jnp.float32))  # (B, N, 8)
        attn = jnp.concatenate(heads, axis=-1).reshape(B * N, D_MODEL)    # (B*N, 32)
        attn = jnp.dot(attn.astype(jnp.bfloat16), outproj_w_ref[l],
                       preferred_element_type=jnp.float32) + outproj_b_ref[l]
        x = _layernorm(x + attn, ln1_w_ref[l], ln1_b_ref[l])

        # ---- feed-forward block (bf16 weights, f32 accumulate) ----
        ff = jnp.dot(x.astype(jnp.bfloat16), ffn_w1_ref[l],
                     preferred_element_type=jnp.float32) + ffn_b1_ref[l]   # (B*N, 2048)
        ff = jnp.maximum(ff, 0.0)
        ff = jnp.dot(ff.astype(jnp.bfloat16), ffn_w2_ref[l],
                     preferred_element_type=jnp.float32) + ffn_b2_ref[l]
        x = _layernorm(x + ff, ln2_w_ref[l], ln2_b_ref[l])

    lidar_repr = jnp.mean(x.reshape(B, N, D_MODEL), axis=1)               # (B, 32)

    # ---- fused output heads (cont tanh head + binary head) in the epilogue --
    # hidden = ReLU([state | lidar] @ [W1c | W1b] + [b1c | b1b]) computed as a
    # split matmul so the (B, 160) `fused` tensor never round-trips through HBM.
    hidden = (jnp.dot(state_ref[...], w1s_ref[...], preferred_element_type=jnp.float32)
              + jnp.dot(lidar_repr, w1l_ref[...], preferred_element_type=jnp.float32)
              + b1_ref[...])
    hidden = jnp.maximum(hidden, 0.0)                                      # (B, 128)
    # Second layer: padded block-diagonal (128, 128); only cols 0..5 are real.
    raw = jnp.dot(hidden, w2_ref[...],
                  preferred_element_type=jnp.float32) + b2_ref[...]        # (B, 128)
    col = jax.lax.broadcasted_iota(jnp.int32, raw.shape, 1)
    out_ref[...] = jnp.where(col < 3, jnp.tanh(raw), raw)   # tanh only on cont head


# ---------------- deterministic parameter init (shapes from __init__) --------
def _uniform(key, shape, bound):
    return jax.random.uniform(key, shape, jnp.float32, minval=-bound, maxval=bound)


def init_params(key, state_dim, lidar_dim=3):
    ks = iter(jax.random.split(key, 64))
    p = {}
    # LSTM(state_dim -> 128)
    b = 1.0 / math.sqrt(HID)
    p['w_ih_t'] = _uniform(next(ks), (state_dim, 4 * HID), b).astype(jnp.bfloat16)
    p['w_hh_t'] = _uniform(next(ks), (HID, 4 * HID), b).astype(jnp.bfloat16)
    p['b_lstm'] = _uniform(next(ks), (1, 4 * HID), b) + _uniform(next(ks), (1, 4 * HID), b)
    # lidar_fc: Linear(3 -> 32)
    b = 1.0 / math.sqrt(lidar_dim)
    p['fc_w_t'] = _uniform(next(ks), (lidar_dim, D_MODEL), b).astype(jnp.bfloat16)
    p['fc_b'] = _uniform(next(ks), (1, D_MODEL), b)
    # 2x TransformerEncoderLayer(d_model=32, nhead=4, ff=2048), stacked on axis 0
    b = 1.0 / math.sqrt(D_MODEL)
    p['inproj_w_t'] = _uniform(next(ks), (N_LAYERS, D_MODEL, 3 * D_MODEL), b).astype(jnp.bfloat16)
    p['inproj_b'] = _uniform(next(ks), (N_LAYERS, 1, 3 * D_MODEL), b)
    p['outproj_w_t'] = _uniform(next(ks), (N_LAYERS, D_MODEL, D_MODEL), b).astype(jnp.bfloat16)
    p['outproj_b'] = _uniform(next(ks), (N_LAYERS, 1, D_MODEL), b)
    p['ln1_w'] = jnp.ones((N_LAYERS, 1, D_MODEL), jnp.float32)
    p['ln1_b'] = jnp.zeros((N_LAYERS, 1, D_MODEL), jnp.float32)
    p['ln2_w'] = jnp.ones((N_LAYERS, 1, D_MODEL), jnp.float32)
    p['ln2_b'] = jnp.zeros((N_LAYERS, 1, D_MODEL), jnp.float32)
    p['ffn_w1_t'] = _uniform(next(ks), (N_LAYERS, D_MODEL, FF_DIM), b).astype(jnp.bfloat16)
    p['ffn_b1'] = _uniform(next(ks), (N_LAYERS, 1, FF_DIM), b)
    bf = 1.0 / math.sqrt(FF_DIM)
    p['ffn_w2_t'] = _uniform(next(ks), (N_LAYERS, FF_DIM, D_MODEL), bf).astype(jnp.bfloat16)
    p['ffn_b2'] = _uniform(next(ks), (N_LAYERS, 1, D_MODEL), bf)

    # heads: Linear(160->64) ReLU Linear(64->3) (+ Tanh for the cont head),
    # packed so the fused heads kernel does exactly two matmuls.
    b = 1.0 / math.sqrt(FUSED_DIM)
    w1c = _uniform(next(ks), (FUSED_DIM, HEAD_HID), b)
    b1c = _uniform(next(ks), (1, HEAD_HID), b)
    w1b = _uniform(next(ks), (FUSED_DIM, HEAD_HID), b)
    b1b = _uniform(next(ks), (1, HEAD_HID), b)
    b2 = 1.0 / math.sqrt(HEAD_HID)
    w2c = _uniform(next(ks), (HEAD_HID, 3), b2)
    b2c = _uniform(next(ks), (1, 3), b2)
    w2b = _uniform(next(ks), (HEAD_HID, 3), b2)
    b2b = _uniform(next(ks), (1, 3), b2)

    w1_packed = jnp.concatenate([w1c, w1b], axis=1)            # (160, 128)
    p['head_w1_state'] = w1_packed[:HID]                        # (128, 128)
    p['head_w1_lidar'] = w1_packed[HID:]                        # (32, 128)
    p['head_b1'] = jnp.concatenate([b1c, b1b], axis=1)          # (1, 128)
    w2_pad = jnp.zeros((2 * HEAD_HID, OUT_PAD), jnp.float32)    # (128, 128) block-diag, padded
    w2_pad = w2_pad.at[:HEAD_HID, 0:3].set(w2c)
    w2_pad = w2_pad.at[HEAD_HID:, 3:6].set(w2b)
    p['head_w2'] = w2_pad
    b2_pad = jnp.zeros((1, OUT_PAD), jnp.float32)
    b2_pad = b2_pad.at[:, 0:3].set(b2c).at[:, 3:6].set(b2b)
    p['head_b2'] = b2_pad
    return p


# ---------------- wrapper -----------------------------------------------------
def hybrid_drone_policy(params, state_seq, lidar_points):
    # state_seq: (B, T, D_state) batch-first ; lidar_points: (B, N, 3)
    B, T, D_state = state_seq.shape

    # --- LSTM: final hidden state (B, 128) ---
    state_tm = jnp.transpose(state_seq, (1, 0, 2)).astype(jnp.float32)   # (T, B, D_state)
    state_repr = pl.pallas_call(
        lstm_kernel,
        out_shape=jax.ShapeDtypeStruct((B, HID), jnp.float32),
        scratch_shapes=[pltpu.VMEM((T, B, 4 * HID), jnp.float32)],
    )(state_tm, params['w_ih_t'], params['w_hh_t'], params['b_lstm'])

    # --- lidar branch + fused heads, whole batch in one call ---
    # TODO(synk): for large B, tile the batch with a "parallel" grid axis
    # (multiple-of-2 tiles for the two v7x TensorCores); at B=2 a single call
    # already maximizes matmul M (= B*N rows) with zero grid overhead.
    out_pad = pl.pallas_call(
        lidar_heads_kernel,
        out_shape=jax.ShapeDtypeStruct((B, OUT_PAD), jnp.float32),
    )(lidar_points.astype(jnp.float32), state_repr,
      params['fc_w_t'], params['fc_b'],
      params['inproj_w_t'], params['inproj_b'],
      params['outproj_w_t'], params['outproj_b'],
      params['ln1_w'], params['ln1_b'], params['ln2_w'], params['ln2_b'],
      params['ffn_w1_t'], params['ffn_b1'], params['ffn_w2_t'], params['ffn_b2'],
      params['head_w1_state'], params['head_w1_lidar'], params['head_b1'],
      params['head_w2'], params['head_b2'])

    return out_pad[:, :OUT_DIM]                                          # (B, 6)


if __name__ == "__main__":
    key = jax.random.PRNGKey(0)
    k_param, k_state, k_lidar = jax.random.split(key, 3)

    B, T, D_state, N_points = 2, 8, 16, 8
    params = init_params(k_param, D_state)
    state_seq = jax.random.normal(k_state, (B, T, D_state), jnp.float32)
    lidar_points = jax.random.normal(k_lidar, (B, N_points, 3), jnp.float32)

    out = hybrid_drone_policy(params, state_seq, lidar_points)
    out = jax.block_until_ready(out)
    assert out.shape == (B, OUT_DIM) and out.dtype == jnp.float32
    print("KERNEL_OK")
</pallas_src>

<mosaic_0001>
module attributes {stable_mosaic.version = 11 : i64} {
  func.func @lstm_kernel(%arg0: memref<8x2x16xf32, #tpu.memory_space<vmem>>, %arg1: memref<16x512xbf16, #tpu.memory_space<vmem>>, %arg2: memref<128x512xbf16, #tpu.memory_space<vmem>>, %arg3: memref<1x512xf32, #tpu.memory_space<vmem>>, %arg4: memref<2x128xf32, #tpu.memory_space<vmem>>, %arg5: memref<8x2x512xf32, #tpu.memory_space<vmem>>) attributes {dimension_semantics = [], scalar_prefetch = 0 : i64, scratch_operands = 1 : i64, tpu.core_type = #tpu.core_type<tc>} {
    %c0 = arith.constant 0 : index
    %c0_0 = arith.constant 0 : index
    %c0_1 = arith.constant 0 : index
    %0 = vector.load %arg0[%c0, %c0_0, %c0_1] : memref<8x2x16xf32, #tpu.memory_space<vmem>>, vector<8x2x16xf32>
    %1 = vector.shape_cast %0 : vector<8x2x16xf32> to vector<16x16xf32>
    %2 = arith.truncf %1 : vector<16x16xf32> to vector<16x16xbf16>
    %c0_2 = arith.constant 0 : index
    %c0_3 = arith.constant 0 : index
    %3 = vector.load %arg1[%c0_2, %c0_3] : memref<16x512xbf16, #tpu.memory_space<vmem>>, vector<16x512xbf16>
    %cst = arith.constant dense<0.000000e+00> : vector<16x512xf32>
    %4 = tpu.matmul %2, %3, %cst {dimension_numbers = #tpu.dot_dimension_numbers<[1], [0], [0], [1], [0, 0, 1, 1], [], []>} : vector<16x16xbf16>, vector<16x512xbf16>, vector<16x512xf32> -> vector<16x512xf32>
    %5 = vector.shape_cast %4 : vector<16x512xf32> to vector<8x2x512xf32>
    %c0_4 = arith.constant 0 : index
    %c0_5 = arith.constant 0 : index
    %c0_6 = arith.constant 0 : index
    %6 = vector.load %arg5[%c0_4, %c0_5, %c0_6] : memref<8x2x512xf32, #tpu.memory_space<vmem>>, vector<8x2x512xf32>
    tpu.vector_store %arg5[%c0_4, %c0_5, %c0_6], %5 {strides = array<i32>} : memref<8x2x512xf32, #tpu.memory_space<vmem>>, vector<8x2x512xf32>,
    %c0_7 = arith.constant 0 : index
    %c0_8 = arith.constant 0 : index
    %7 = vector.load %arg3[%c0_7, %c0_8] : memref<1x512xf32, #tpu.memory_space<vmem>>, vector<1x512xf32>
    %c0_9 = arith.constant 0 : index
    %c0_10 = arith.constant 0 : index
    %8 = vector.load %arg2[%c0_9, %c0_10] : memref<128x512xbf16, #tpu.memory_space<vmem>>, vector<128x512xbf16>
    %cst_11 = arith.constant 0.000000e+00 : f32
    %9 = vector.broadcast %cst_11 : f32 to vector<2x128xf32>
    %cst_12 = arith.constant 0.000000e+00 : f32
    %10 = vector.broadcast %cst_12 : f32 to vector<2x128xf32>
    %c0_i32 = arith.constant 0 : i32
    %c8_i32 = arith.constant 8 : i32
    %11 = arith.addi %c0_i32, %c8_i32 : i32
    %c1_i32 = arith.constant 1 : i32
    %12:2 = scf.for %arg6 = %c0_i32 to %11 step %c1_i32 iter_args(%arg7 = %9, %arg8 = %10) -> (vector<2x128xf32>, vector<2x128xf32>)  : i32 {
      %14 = arith.index_cast %arg6 : i32 to index
      %c0_16 = arith.constant 0 : index
      %c0_17 = arith.constant 0 : index
      %15 = vector.load %arg5[%14, %c0_16, %c0_17] : memref<8x2x512xf32, #tpu.memory_space<vmem>>, vector<1x2x512xf32>
      %16 = vector.shape_cast %15 : vector<1x2x512xf32> to vector<2x512xf32>
      %17 = arith.truncf %arg7 : vector<2x128xf32> to vector<2x128xbf16>
      %cst_18 = arith.constant dense<0.000000e+00> : vector<2x512xf32>
      %18 = tpu.matmul %17, %8, %cst_18 {dimension_numbers = #tpu.dot_dimension_numbers<[1], [0], [0], [1], [0, 0, 1, 1], [], []>} : vector<2x128xbf16>, vector<128x512xbf16>, vector<2x512xf32> -> vector<2x512xf32>
      %19 = arith.addf %16, %18 : vector<2x512xf32>
      %20 = vector.broadcast %7 : vector<1x512xf32> to vector<2x512xf32>
      %21 = arith.addf %19, %20 : vector<2x512xf32>
      %22 = vector.extract_strided_slice %21 {offsets = [0, 0], sizes = [2, 128], strides = [1, 1]} : vector<2x512xf32> to vector<2x128xf32>
      %cst_19 = arith.constant 5.000000e-01 : f32
      %23 = vector.broadcast %cst_19 : f32 to vector<2x128xf32>
      %24 = arith.mulf %23, %22 : vector<2x128xf32>
      %25 = math.tanh %24 : vector<2x128xf32>
      %cst_20 = arith.constant 5.000000e-01 : f32
      %26 = vector.broadcast %cst_20 : f32 to vector<2x128xf32>
      %27 = arith.mulf %26, %25 : vector<2x128xf32>
      %cst_21 = arith.constant 5.000000e-01 : f32
      %28 = vector.broadcast %cst_21 : f32 to vector<2x128xf32>
      %29 = arith.addf %27, %28 : vector<2x128xf32>
      %30 = vector.extract_strided_slice %21 {offsets = [0, 128], sizes = [2, 128], strides = [1, 1]} : vector<2x512xf32> to vector<2x128xf32>
      %cst_22 = arith.constant 5.000000e-01 : f32
      %31 = vector.broadcast %cst_22 : f32 to vector<2x128xf32>
      %32 = arith.mulf %31, %30 : vector<2x128xf32>
      %33 = math.tanh %32 : vector<2x128xf32>
      %cst_23 = arith.constant 5.000000e-01 : f32
      %34 = vector.broadcast %cst_23 : f32 to vector<2x128xf32>
      %35 = arith.mulf %34, %33 : vector<2x128xf32>
      %cst_24 = arith.constant 5.000000e-01 : f32
      %36 = vector.broadcast %cst_24 : f32 to vector<2x128xf32>
      %37 = arith.addf %35, %36 : vector<2x128xf32>
      %38 = vector.extract_strided_slice %21 {offsets = [0, 256], sizes = [2, 128], strides = [1, 1]} : vector<2x512xf32> to vector<2x128xf32>
      %39 = math.tanh %38 : vector<2x128xf32>
      %40 = vector.extract_strided_slice %21 {offsets = [0, 384], sizes = [2, 128], strides = [1, 1]} : vector<2x512xf32> to vector<2x128xf32>
      %cst_25 = arith.constant 5.000000e-01 : f32
      %41 = vector.broadcast %cst_25 : f32 to vector<2x128xf32>
      %42 = arith.mulf %41, %40 : vector<2x128xf32>
      %43 = math.tanh %42 : vector<2x128xf32>
      %cst_26 = arith.constant 5.000000e-01 : f32
      %44 = vector.broadcast %cst_26 : f32 to vector<2x128xf32>
      %45 = arith.mulf %44, %43 : vector<2x128xf32>
      %cst_27 = arith.constant 5.000000e-01 : f32
      %46 = vector.broadcast %cst_27 : f32 to vector<2x128xf32>
      %47 = arith.addf %45, %46 : vector<2x128xf32>
      %48 = arith.mulf %37, %arg8 : vector<2x128xf32>
      %49 = arith.mulf %29, %39 : vector<2x128xf32>
      %50 = arith.addf %48, %49 : vector<2x128xf32>
      %51 = math.tanh %50 : vector<2x128xf32>
      %52 = arith.mulf %47, %51 : vector<2x128xf32>
      scf.yield %52, %50 : vector<2x128xf32>, vector<2x128xf32>
    }
    %c8_i32_13 = arith.constant 8 : i32
    %c0_14 = arith.constant 0 : index
    %c0_15 = arith.constant 0 : index
    %13 = vector.load %arg4[%c0_14, %c0_15] : memref<2x128xf32, #tpu.memory_space<vmem>>, vector<2x128xf32>
    tpu.vector_store %arg4[%c0_14, %c0_15], %12#0 {strides = array<i32>} : memref<2x128xf32, #tpu.memory_space<vmem>>, vector<2x128xf32>,
    return
  }
}

</mosaic_0001>

<bundles_post_ra>
// kernel: tpu_custom_call.1
= control target key start
LH: loop header
LB: loop body
LE: loop exit
PB: predicated region body
PF: predicated region fallthrough
CT: control target
= control target key end

     0   :  { %9 = vsyncpa [#allocation4], 0  ;;  %s1288_s0 = inlined_call_operand.hbm [shape: f32[8,2,16], index: 0, kind: input, shape index: {}]   ;;  %s1289_s1 = inlined_call_operand.hbm [shape: bf16[16,512], index: 1, kind: input, shape index: {}]   ;;  %s1290_s2 = inlined_call_operand.hbm [shape: bf16[128,512], index: 2, kind: input, shape index: {}]   ;;  %s1291_s3 = inlined_call_operand.hbm [shape: f32[1,512], index: 3, kind: input, shape index: {}]   ;;  %s1292_s4 = inlined_call_operand.hbm [shape: f32[2,128], index: 4, kind: output, shape index: {}]  }
   0x1   :  { %10 = vsyncpa [#allocation7], 0 }
   0x2   :  { %11 = vsyncpa [#allocation10], 0  ;;  %s30_s17 = sshll.u32 %s1289_s1, 4  ;;  %s31_s17 = int_to_ptr.hbm [resolvable:$true] %s30_s17 }
   0x3   :  { %12 = vsyncpa [#allocation5], 0  ;;  %s989_s18 = smov [#allocation6]   ;;  %s17_s22 = sshll.u32 %s1288_s0, 4  ;;  %s18_s22 = int_to_ptr.hbm [resolvable:$true] %s17_s22 }
   0x4   :  { %s32_s19 = sshll.u32 %s989_s18, 4  ;;  %s990_s23 = smov 256   ;;  %s33_s19 = int_to_ptr.vmem [resolvable:$true] %s32_s19 }
   0x5   :  { %s991_s24 = smov 16   ;;  %s992_s25 = smov [#allocation3]  }
   0x6   :  { %38 = dma.hbm_to_vmem [thread:$0]  %s31_s17, 512, %s33_s19, [#allocation7], %s990_s23, %s990_s23, %s991_s24  }
   0x7   :  { %s19_s26 = sshll.u32 %s992_s25, 4  ;;  %s993_s27 = smov 32   ;;  %s20_s26 = int_to_ptr.vmem [resolvable:$true] %s19_s26 }
   0x8   :  { %s994_s28 = smov 2   ;;  %s43_s30 = sshll.u32 %s1290_s2, 4  ;;  %s44_s30 = int_to_ptr.hbm [resolvable:$true] %s43_s30 }
   0x9   :  { %25 = dma.hbm_to_vmem [thread:$0]  %s18_s22, 256, %s20_s26, [#allocation4], %s993_s27, %s993_s27, %s994_s28  }
   0xa   :  { %s995_s5 = smov [#allocation8]   ;;  %s57_s8 = sshll.u32 %s1291_s3, 4  ;;  %s58_s8 = int_to_ptr.hbm [resolvable:$true] %s57_s8 }
   0xb   :  { %s45_s6 = sshll.u32 %s995_s5, 4  ;;  %s996_s9 = smov [#allocation9]   ;;  %s46_s6 = int_to_ptr.vmem [resolvable:$true] %s45_s6 }
   0xc   :  { %51 = dma.hbm_to_vmem [thread:$0]  %s44_s30, 4096, %s46_s6, [#allocation7], %s990_s23, %s990_s23, %s991_s24  }
   0xd   :  { %s59_s10 = sshll.u32 %s996_s9, 4  ;;  %s60_s10 = int_to_ptr.vmem [resolvable:$true] %s59_s10 }
   0xe   :  { %62 = dma.hbm_to_vmem [thread:$0]  %s58_s8, 64, %s60_s10, [#allocation10]  }
   0xf   :  { %969 = dma.done.wait [#allocation4], 256  }
  0x10   :  { %970 = vsyncadd [#allocation4], 4294967040 }
  0x11   :  { %971 = dma.done.wait [#allocation7], 4608  }
  0x12   :  { %972 = vsyncadd [#allocation7], 4294962688 }
  0x13   :  { %973 = dma.done.wait [#allocation10], 64  }
  0x14   :  { %974 = vsyncadd [#allocation10], 4294967232  ;;  %v1035_v0 = vld [vmem:[#allocation9] sm:$0xf]  ;;  %v1037_v1 = vld [vmem:[#allocation8 + $0x4] sm:$0xf] }
  0x15   :  { %1295 = vst [vmem:[#allocation16_spill] sm:$0xff] %v1035_v0  ;;  %v1039_v2 = vld [vmem:[#allocation8] sm:$0xf]  ;;  %v1041_v3 = vld [vmem:[#allocation8 + $0xc] sm:$0xf]  ;;  %vm140_vm0 = vcmask 130048  }
  0x16   :  { %1296 = vst [vmem:[#allocation17_spill] sm:$0xff] %v1037_v1  ;;  %v1043_v4 = vld [vmem:[#allocation8 + $0x8] sm:$0xf]  ;;  %v1045_v5 = vld [vmem:[#allocation8 + $0x10] sm:$0xf0]  ;;  %vm214_vm1 = vcmask 1041408  }
  0x17   :  { %1297 = vst [vmem:[#allocation18_spill] sm:$0xff] %v1039_v2  ;;  %v1047_v6 = vld [vmem:[#allocation8 + $0xc] sm:$0xf0]  ;;  %v1049_v7 = vld [vmem:[#allocation8 + $0x18] sm:$0xf0]  ;;  %vm220_vm2 = vcmask 1043458  }
  0x18   :  { %1298 = vst [vmem:[#allocation19_spill] sm:$0xff] %v1041_v3  ;;  %v1051_v8 = vld [vmem:[#allocation8 + $0x14] sm:$0xf0]  ;;  %v1053_v9 = vld [vmem:[#allocation8 + $0x24] sm:$0xf]  ;;  %vm216_vm3 = vcmask 1045508  }
  0x19   :  { %1299 = vst [vmem:[#allocation20_spill] sm:$0xff] %v1043_v4  ;;  %v1055_v10 = vld [vmem:[#allocation8 + $0x20] sm:$0xf]  ;;  %v1057_v11 = vld [vmem:[#allocation8 + $0x2c] sm:$0xf]  ;;  %vm222_vm4 = vcmask 1045504  }
  0x1a   :  { %1300 = vst [vmem:[#allocation21_spill] sm:$0xff] %v1045_v5  ;;  %v1059_v12 = vld [vmem:[#allocation8 + $0x28] sm:$0xf]  ;;  %v1061_v13 = vld [vmem:[#allocation8 + $0x30] sm:$0xf0]  ;;  %vm218_vm5 = vcmask 1043456  }
  0x1b   :  { %1301 = vst [vmem:[#allocation22_spill] sm:$0xff] %v1047_v6  ;;  %v1063_v14 = vld [vmem:[#allocation8 + $0x2c] sm:$0xf0]  ;;  %v1065_v15 = vld [vmem:[#allocation8 + $0x38] sm:$0xf0]  ;;  %vm224_vm6 = vcmask 1045506  }
  0x1c   :  { %1302 = vst [vmem:[#allocation23_spill] sm:$0xff] %v1049_v7  ;;  %v1067_v16 = vld [vmem:[#allocation8 + $0x34] sm:$0xf0]  ;;  %v1069_v17 = vld [vmem:[#allocation8 + $0x44] sm:$0xf]  ;;  %s1193_s2 = smov 0  }
  0x1d   :  { %1303 = vst [vmem:[#allocation24_spill] sm:$0xff] %v1051_v8  ;;  %v1071_v18 = vld [vmem:[#allocation8 + $0x40] sm:$0xf]  ;;  %v1073_v19 = vld [vmem:[#allocation8 + $0x4c] sm:$0xf] }
  0x1e   :  { %1304 = vst [vmem:[#allocation25_spill] sm:$0xff] %v1053_v9  ;;  %v1075_v20 = vld [vmem:[#allocation8 + $0x48] sm:$0xf]  ;;  %v1077_v21 = vld [vmem:[#allocation8 + $0x50] sm:$0xf0] }
  0x1f   :  { %1305 = vst [vmem:[#allocation26_spill] sm:$0xff] %v1055_v10  ;;  %v1079_v22 = vld [vmem:[#allocation8 + $0x4c] sm:$0xf0]  ;;  %v1081_v23 = vld [vmem:[#allocation8 + $0x58] sm:$0xf0] }
  0x20   :  { %1306 = vst [vmem:[#allocation27_spill] sm:$0xff] %v1057_v11  ;;  %v1083_v24 = vld [vmem:[#allocation8 + $0x54] sm:$0xf0]  ;;  %v1085_v25 = vld [vmem:[#allocation8 + $0x64] sm:$0xf] }
  0x21   :  { %1307 = vst [vmem:[#allocation28_spill] sm:$0xff] %v1059_v12  ;;  %v1087_v26 = vld [vmem:[#allocation8 + $0x60] sm:$0xf]  ;;  %v1089_v27 = vld [vmem:[#allocation8 + $0x6c] sm:$0xf] }
  0x22   :  { %1308 = vst [vmem:[#allocation29_spill] sm:$0xff] %v1061_v13  ;;  %v1091_v28 = vld [vmem:[#allocation8 + $0x68] sm:$0xf]  ;;  %v1093_v29 = vld [vmem:[#allocation8 + $0x70] sm:$0xf0] }
  0x23   :  { %1309 = vst [vmem:[#allocation30_spill] sm:$0xff] %v1063_v14  ;;  %v1095_v30 = vld [vmem:[#allocation8 + $0x6c] sm:$0xf0]  ;;  %v1097_v31 = vld [vmem:[#allocation8 + $0x78] sm:$0xf0] }
  0x24   :  { %1310 = vst [vmem:[#allocation31_spill] sm:$0xff] %v1065_v15  ;;  %v1099_v32 = vld [vmem:[#allocation8 + $0x74] sm:$0xf0]  ;;  %v1101_v33 = vld [vmem:[#allocation8 + $0x84] sm:$0xf] }
  0x25   :  { %1311 = vst [vmem:[#allocation32_spill] sm:$0xff] %v1067_v16  ;;  %v1103_v34 = vld [vmem:[#allocation8 + $0x80] sm:$0xf]  ;;  %v1105_v35 = vld [vmem:[#allocation8 + $0x8c] sm:$0xf] }
  0x26   :  { %1312 = vst [vmem:[#allocation33_spill] sm:$0xff] %v1069_v17  ;;  %v1107_v36 = vld [vmem:[#allocation8 + $0x88] sm:$0xf]  ;;  %v1109_v37 = vld [vmem:[#allocation8 + $0x90] sm:$0xf0] }
  0x27   :  { %1313 = vst [vmem:[#allocation34_spill] sm:$0xff] %v1073_v19  ;;  %v1111_v38 = vld [vmem:[#allocation8 + $0x8c] sm:$0xf0]  ;;  %v1113_v39 = vld [vmem:[#allocation8 + $0x98] sm:$0xf0] }
  0x28   :  { %1314 = vst [vmem:[#allocation35_spill] sm:$0xff] %v1075_v20  ;;  %v1115_v40 = vld [vmem:[#allocation8 + $0x94] sm:$0xf0]  ;;  %v1117_v41 = vld [vmem:[#allocation8 + $0xa4] sm:$0xf] }
  0x29   :  { %1315 = vst [vmem:[#allocation36_spill] sm:$0xff] %v1077_v21  ;;  %v1119_v42 = vld [vmem:[#allocation8 + $0xa0] sm:$0xf]  ;;  %v1121_v43 = vld [vmem:[#allocation8 + $0xac] sm:$0xf] }
  0x2a   :  { %1316 = vst [vmem:[#allocation37_spill] sm:$0xff] %v1081_v23  ;;  %v1123_v44 = vld [vmem:[#allocation8 + $0xa8] sm:$0xf]  ;;  %v1125_v45 = vld [vmem:[#allocation8 + $0xb0] sm:$0xf0] }
  0x2b   :  { %1317 = vst [vmem:[#allocation38_spill] sm:$0xff] %v1083_v24  ;;  %v1127_v46 = vld [vmem:[#allocation8 + $0xac] sm:$0xf0]  ;;  %v1129_v47 = vld [vmem:[#allocation8 + $0xb8] sm:$0xf0] }
  0x2c   :  { %v1131_v48 = vld [vmem:[#allocation8 + $0xb4] sm:$0xf0]  ;;  %v1133_v49 = vld [vmem:[#allocation8 + $0xc4] sm:$0xf]  ;;  %v1135_v50 = vld [vmem:[#allocation8 + $0xc0] sm:$0xf] }
  0x2d   :  { %v1137_v51 = vld [vmem:[#allocation8 + $0xcc] sm:$0xf]  ;;  %v1139_v52 = vld [vmem:[#allocation8 + $0xc8] sm:$0xf]  ;;  %v1141_v53 = vld [vmem:[#allocation8 + $0xd0] sm:$0xf0] }
  0x2e   :  { %v1143_v54 = vld [vmem:[#allocation8 + $0xcc] sm:$0xf0]  ;;  %v1145_v55 = vld [vmem:[#allocation8 + $0xd8] sm:$0xf0]  ;;  %v1147_v56 = vld [vmem:[#allocation8 + $0xd4] sm:$0xf0] }
  0x2f   :  { %v1149_v57 = vld [vmem:[#allocation8 + $0xe4] sm:$0xf]  ;;  %v1151_v58 = vld [vmem:[#allocation8 + $0xe0] sm:$0xf]  ;;  %v1153_v59 = vld [vmem:[#allocation8 + $0xec] sm:$0xf] }
  0x30   :  { %v1155_v60 = vld [vmem:[#allocation8 + $0xe8] sm:$0xf]  ;;  %v1157_v61 = vld [vmem:[#allocation8 + $0xf0] sm:$0xf0]  ;;  %v1159_v62 = vld [vmem:[#allocation8 + $0xec] sm:$0xf0] }
  0x31   :  { %v1161_v63 = vld [vmem:[#allocation8 + $0xf8] sm:$0xf0]  ;;  %v1163_v0 = vld [vmem:[#allocation8 + $0xf4] sm:$0xf0]  ;;  %v609_v3 = vld [vmem:[#allocation6] sm:$0xf] }
  0x32   :  { %1318 = vst [vmem:[#allocation39_spill] sm:$0xff] %v1163_v0  ;;  %v759_v7 = vld [vmem:[#allocation6 + $0xc] sm:$0xf0]  ;;  %v757_v8 = vld [vmem:[#allocation6 + $0x4] sm:$0xf] }
  0x33   :  { %v611_v4 = vld [vmem:[#allocation6 + $0x10] sm:$0xf0]  ;;  %v610_v1 = vor.u32 %v759_v7, %v609_v3  ;;  %v617_v6 = vld [vmem:[#allocation6 + $0x8] sm:$0xf]  ;;  %v760_v2 = vld [vmem:[#allocation6 + $0x14] sm:$0xf0] }
  0x34   :  { %v614_v5 = vor.u32 %v757_v8, %v611_v4  ;;  %v758_v11 = vld [vmem:[#allocation6 + $0xc] sm:$0xf]  ;;  %v618_v15 = vor.u32 %v760_v2, %v617_v6  ;;  %v619_v16 = vld [vmem:[#allocation6 + $0x18] sm:$0xf0]  ;;  %v80_v12 = vld [vmem:[#allocation3] sm:$0x3] }
  0x35   :  { %151 = vmatpush.bf16.msra.mxu0 %v610_v1  ;;  %v622_v9 = vor.u32 %v758_v11, %v619_v16  ;;  %v81_v13 = vld [vmem:[#allocation3 + $0x2] sm:$0x3]  ;;  %v82_v14 = vld [vmem:[#allocation3 + $0x4] sm:$0x3]  ;;  %v83_v10 = vld [vmem:[#allocation3 + $0x6] sm:$0x3] }
  0x36   :  { %165 = vmatpush.bf16.msra.mxu1 %v614_v5  ;;  %179 = vmatpush.bf16.msra.mxu2 %v618_v15  ;;  %96 = vst [vmem:[#allocation1] ss:$4 sm:$0xff] %v80_v12  ;;  %v84_v19 = vld [vmem:[#allocation3 + $0x8] sm:$0x3]  ;;  %v85_v23 = vld [vmem:[#allocation3 + $0xa] sm:$0x3] }
  0x37   :  { %193 = vmatpush.bf16.msra.mxu3 %v622_v9  ;;  %98 = vst [vmem:[#allocation1 + $0x1] ss:$4 sm:$0xff] %v81_v13  ;;  %v86_v3 = vld [vmem:[#allocation3 + $0xc] sm:$0x3]  ;;  %v87_v4 = vld [vmem:[#allocation3 + $0xe] sm:$0x3] }
  0x38   :  { %100 = vst [vmem:[#allocation1 + $0x2] ss:$4 sm:$0xff] %v82_v14 }
  0x39   :  { %102 = vst [vmem:[#allocation1 + $0x3] ss:$4 sm:$0xff] %v83_v10 }
  0x3a   :  { %104 = vst [vmem:[#allocation1 + $0x20] ss:$4 sm:$0xff] %v84_v19 }
  0x3b   :  { %106 = vst [vmem:[#allocation1 + $0x21] ss:$4 sm:$0xff] %v85_v23 }
  0x3c   :  { %108 = vst [vmem:[#allocation1 + $0x22] ss:$4 sm:$0xff] %v86_v3 }
  0x3d   :  { %110 = vst [vmem:[#allocation1 + $0x23] ss:$4 sm:$0xff] %v87_v4 }
  0x40   :  { %v111_v1 = vld.sshfl [vmem:[#allocation1] sm:$0xff pattern:$0x73625140] }
  0x44   :  { %v112_v2 = vld.sshfl [vmem:[#allocation1 + $0x20] sm:$0xff pattern:$0x73625140] }
  0x45   :  { %v115_v5 = vpack.c.bf16 %v112_v2, %v111_v1 }
  0x47   :  { %623 = vmatmul.msk.bf16.vlgmr.msra.gmra.mxu0 %vm140_vm0, %v115_v5  ;;  %624 = vmatmul.msk.bf16.vlgmr.msra.gmra.mxu1 %vm140_vm0, %v115_v5 }
  0x48   :  { %625 = vmatmul.msk.bf16.vlgmr.msra.gmra.mxu2 %vm140_vm0, %v115_v5  ;;  %626 = vmatmul.msk.bf16.vlgmr.msra.gmra.mxu3 %vm140_vm0, %v115_v5 }
  0xc4   :  { %v167_v6 = vpop.f32.mrf.mxu1  ;;  %v153_v8 = vpop.f32.mrf.mxu0 }
  0xc5   :  { %v208_v7 = vrot.slane %v167_v6, 6 }
  0xc7   :  { %v215_v9 = vsel %vm214_vm1, %v153_v8, %v208_v7  ;;  %v221_v10 = vsel %vm220_vm2, %v153_v8, %v208_v7  ;;  %v227_v13 = vsel %vm216_vm3, %v153_v8, %v208_v7  ;;  %v231_v14 = vsel %vm222_vm4, %v208_v7, %v153_v8 }
  0xcb   :  { %v181_v11 = vpop.f32.mrf.mxu2  ;;  %v195_v12 = vpop.f32.mrf.mxu3 }
  0xcc   :  { %v209_v15 = vrot.slane %v181_v11, 4  ;;  %v210_v16 = vrot.slane %v195_v12, 2  ;;  %v169_v1 = vpop.f32.mrf.mxu1 }
  0xcd   :  { %v211_v12 = vrot.slane %v169_v1, 6 }
  0xce   :  { %v217_v19 = vsel %vm216_vm3, %v209_v15, %v210_v16  ;;  %v223_v23 = vsel %vm222_vm4, %v210_v16, %v209_v15  ;;  %v228_v3 = vsel %vm214_vm1, %v209_v15, %v210_v16  ;;  %v232_v4 = vsel %vm220_vm2, %v209_v15, %v210_v16  ;;  %v155_v15 = vpop.f32.mrf.mxu0 }
  0xcf   :  { %v219_v2 = vsel %vm218_vm5, %v215_v9, %v217_v19  ;;  %v225_v5 = vsel %vm224_vm6, %v221_v10, %v223_v23  ;;  %v229_v6 = vsel %vm218_vm5, %v228_v3, %v227_v13  ;;  %v233_v24 = vsel %vm224_vm6, %v232_v4, %v231_v14 }
  0xd0   :  { %v226_v7 = vrot.slane %v225_v5, 2  ;;  %v230_v8 = vrot.slane %v229_v6, 4  ;;  %v234_v11 = vrot.slane %v233_v24, 6  ;;  %258 = vst [vmem:[#allocation2] sm:$0xff] %v219_v2  ;;  %v235_v9 = vsel %vm214_vm1, %v155_v15, %v211_v12 }
  0xd1   :  { %v238_v10 = vsel %vm220_vm2, %v155_v15, %v211_v12  ;;  %v242_v13 = vsel %vm216_vm3, %v155_v15, %v211_v12  ;;  %v246_v14 = vsel %vm222_vm4, %v211_v12, %v155_v15 }
  0xd2   :  { %259 = vst [vmem:[#allocation2 + $0x8] sm:$0xff] %v226_v7  ;;  %v1189_v7 = vmov 0.0  }
  0xd3   :  { %260 = vst [vmem:[#allocation2 + $0x10] sm:$0xff] %v230_v8  ;;  %v183_v20 = vpop.f32.mrf.mxu2  ;;  %v197_v17 = vpop.f32.mrf.mxu3  ;;  %v1191_v8 = vmov 0.0  }
  0xd4   :  { %261 = vst [vmem:[#allocation2 + $0x18] sm:$0xff] %v234_v11  ;;  %v212_v16 = vrot.slane %v183_v20, 4  ;;  %v213_v21 = vrot.slane %v197_v17, 2 }
  0xd6   :  { %v236_v24 = vsel %vm216_vm3, %v212_v16, %v213_v21  ;;  %v239_v19 = vsel %vm222_vm4, %v213_v21, %v212_v16  ;;  %v243_v23 = vsel %vm214_vm1, %v212_v16, %v213_v21  ;;  %v247_v3 = vsel %vm220_vm2, %v212_v16, %v213_v21 }
  0xd7   :  { %v237_v4 = vsel %vm218_vm5, %v235_v9, %v236_v24  ;;  %v240_v17 = vsel %vm224_vm6, %v238_v10, %v239_v19  ;;  %v244_v20 = vsel %vm218_vm5, %v243_v23, %v242_v13  ;;  %v248_v1 = vsel %vm224_vm6, %v247_v3, %v246_v14 }
  0xd8   :  { %v241_v2 = vrot.slane %v240_v17, 2  ;;  %v245_v5 = vrot.slane %v244_v20, 4  ;;  %v249_v6 = vrot.slane %v248_v1, 6  ;;  %262 = vst [vmem:[#allocation2 + $0x20] sm:$0xff] %v237_v4 }
  0xda   :  { %263 = vst [vmem:[#allocation2 + $0x28] sm:$0xff] %v241_v2 }
  0xdb   :  { %264 = vst [vmem:[#allocation2 + $0x30] sm:$0xff] %v245_v5 }
  0xdc   :  { %265 = vst [vmem:[#allocation2 + $0x38] sm:$0xff] %v249_v6 }
  0xdd LB: > { %v744_v21 = vor.u32 %v1159_v62, %v1151_v58  ;;  %v748_v11 = vor.u32 %v1149_v57, %v1157_v61  ;;  %v1319_v0 = vld [vmem:[#allocation39_spill] sm:$0xff]  ;;  %v756_v15 = vor.u32 %v1153_v59, %v1161_v63  ;;  %v728_v16 = vor.u32 %v1143_v54, %v1135_v50  ;;  %s793_s3 = sshll.u32 %s987_s2, 3  ;;  %s304_s2 = sadd.s32 1, %s987_s2   ;;  %s987_s2 = sphi %s1193_s2, %s304_s2   ;;  %v983_v8 = vphi %v1191_v8, %v1343_v8   ;;  %v979_v7 = vphi %v1189_v7, %v571_v7  }
  0xde   : > { %v752_v12 = vor.u32 %v1319_v0, %v1155_v60  ;;  %v732_v9 = vor.u32 %v1133_v49, %v1141_v53  ;;  %v736_v10 = vor.u32 %v1147_v56, %v1139_v52  ;;  %v740_v13 = vor.u32 %v1137_v51, %v1145_v55  ;;  %s309_s11 = scalar_lea.vmem [#allocation2], %s793_s3  ;;  %p301_p0 = scmp.ge.s32.totalorder %s304_s2, 8  }
  0xdf   : > { %472 = vmatpush.bf16.msra.mxu0 %v744_v21  ;;  %485 = vmatpush.bf16.msra.mxu1 %v748_v11  ;;  %v712_v14 = vor.u32 %v1127_v46, %v1119_v42  ;;  %v716_v24 = vor.u32 %v1117_v41, %v1125_v45  ;;  %v720_v19 = vor.u32 %v1131_v48, %v1123_v44  ;;  %v1320_v11 = vld [vmem:[#allocation36_spill] sm:$0xff]  ;;  %s582_s14 = sshll.u32 (%p301_p0), %s1292_s4, 4  ;;  %s997_s15 = smov (%p301_p0), [#allocation11]   ;;  %s583_s14 = int_to_ptr.hbm [resolvable:$true] %s582_s14 }
  0xe0   : > { %498 = vmatpush.bf16.msra.mxu2 %v752_v12  ;;  %511 = vmatpush.bf16.msra.mxu3 %v756_v15  ;;  %v724_v23 = vor.u32 %v1121_v43, %v1129_v47  ;;  %v696_v3 = vor.u32 %v1111_v38, %v1103_v34  ;;  %v700_v4 = vor.u32 %v1101_v33, %v1109_v37  ;;  %v1321_v12 = vld [vmem:[#allocation33_spill] sm:$0xff]  ;;  %s580_s16 = sshll.u32 (%p301_p0), %s997_s15, 4  ;;  %s581_s16 = int_to_ptr.vmem [resolvable:$true] %s580_s16 }
  0xe1   : > { %v704_v17 = vor.u32 %v1115_v40, %v1107_v36  ;;  %v708_v20 = vor.u32 %v1105_v35, %v1113_v39  ;;  %v680_v1 = vor.u32 %v1095_v30, %v1087_v26  ;;  %v684_v2 = vor.u32 %v1085_v25, %v1093_v29 }
  0xe2   : > { %v688_v5 = vor.u32 %v1099_v32, %v1091_v28  ;;  %v692_v6 = vor.u32 %v1089_v27, %v1097_v31  ;;  %v664_v21 = vor.u32 %v1079_v22, %v1071_v18  ;;  %v668_v15 = vor.u32 %v1321_v12, %v1320_v11  ;;  %v1333_v11 = vld [vmem:[#allocation27_spill] sm:$0xff] }
  0xe3   : > { %473 = vmatpush.bf16.msra.mxu0 %v728_v16  ;;  %486 = vmatpush.bf16.msra.mxu1 %v732_v9  ;;  %v1322_v16 = vld [vmem:[#allocation35_spill] sm:$0xff]  ;;  %v1323_v9 = vld [vmem:[#allocation38_spill] sm:$0xff] }
  0xe4   : > { %499 = vmatpush.bf16.msra.mxu2 %v736_v10  ;;  %512 = vmatpush.bf16.msra.mxu3 %v740_v13  ;;  %v672_v10 = vor.u32 %v1323_v9, %v1322_v16  ;;  %v1324_v13 = vld [vmem:[#allocation37_spill] sm:$0xff]  ;;  %v1334_v16 = vld [vmem:[#allocation18_spill] sm:$0xff] }
  0xe5   : > { %v1335_v9 = vld [vmem:[#allocation22_spill] sm:$0xff] }
  0xe7   : > { %474 = vmatpush.bf16.msra.mxu0 %v712_v14  ;;  %487 = vmatpush.bf16.msra.mxu1 %v716_v24  ;;  %v1325_v14 = vld [vmem:[#allocation34_spill] sm:$0xff] }
  0xe8   : > { %500 = vmatpush.bf16.msra.mxu2 %v720_v19  ;;  %513 = vmatpush.bf16.msra.mxu3 %v724_v23  ;;  %v676_v24 = vor.u32 %v1325_v14, %v1324_v13  ;;  %v1326_v19 = vld [vmem:[#allocation26_spill] sm:$0xff]  ;;  %v1337_v13 = vld [vmem:[#allocation17_spill] sm:$0xff] }
  0xe9   : > { %v1327_v23 = vld [vmem:[#allocation30_spill] sm:$0xff] }
  0xeb   : > { %475 = vmatpush.bf16.msra.mxu0 %v696_v3  ;;  %488 = vmatpush.bf16.msra.mxu1 %v700_v4  ;;  %v648_v3 = vor.u32 %v1327_v23, %v1326_v19  ;;  %v1328_v4 = vld [vmem:[#allocation29_spill] sm:$0xff]  ;;  %v1338_v19 = vld [vmem:[#allocation20_spill] sm:$0xff] }
  0xec   : > { %501 = vmatpush.bf16.msra.mxu2 %v704_v17  ;;  %514 = vmatpush.bf16.msra.mxu3 %v708_v20  ;;  %v1329_v17 = vld [vmem:[#allocation25_spill] sm:$0xff]  ;;  %v1339_v23 = vld [vmem:[#allocation24_spill] sm:$0xff] }
  0xed   : > { %v652_v20 = vor.u32 %v1329_v17, %v1328_v4  ;;  %v1341_v4 = vld [vmem:[#allocation19_spill] sm:$0xff] }
  0xef   : > { %476 = vmatpush.bf16.msra.mxu0 %v680_v1  ;;  %489 = vmatpush.bf16.msra.mxu1 %v684_v2  ;;  %v1330_v1 = vld [vmem:[#allocation28_spill] sm:$0xff] }
  0xf0   : > { %502 = vmatpush.bf16.msra.mxu2 %v688_v5  ;;  %515 = vmatpush.bf16.msra.mxu3 %v692_v6  ;;  %v1331_v2 = vld [vmem:[#allocation32_spill] sm:$0xff]  ;;  %v1332_v6 = vld [vmem:[#allocation31_spill] sm:$0xff] }
  0xf1   : > { %v656_v5 = vor.u32 %v1331_v2, %v1330_v1  ;;  %v660_v12 = vor.u32 %v1333_v11, %v1332_v6  ;;  %v311_v1 = vpack.c.bf16 %v983_v8, %v983_v8 }
  0xf3   : > { %477 = vmatpush.bf16.msra.mxu0 %v664_v21  ;;  %490 = vmatpush.bf16.msra.mxu1 %v668_v15  ;;  %v632_v21 = vor.u32 %v1335_v9, %v1334_v16  ;;  %v1336_v15 = vld [vmem:[#allocation21_spill] sm:$0xff] }
  0xf4   : > { %503 = vmatpush.bf16.msra.mxu2 %v672_v10  ;;  %516 = vmatpush.bf16.msra.mxu3 %v676_v24  ;;  %v636_v14 = vor.u32 %v1337_v13, %v1336_v15  ;;  %v640_v10 = vor.u32 %v1339_v23, %v1338_v19  ;;  %v1340_v24 = vld [vmem:[#allocation23_spill] sm:$0xff] }
  0xf5   : > { %v644_v17 = vor.u32 %v1341_v4, %v1340_v24 }
  0xf7   : > { %478 = vmatpush.bf16.msra.mxu0 %v648_v3  ;;  %491 = vmatpush.bf16.msra.mxu1 %v652_v20  ;;  %v1342_v3 = vld [vmem:[#allocation16_spill] sm:$0xff] }
  0xf8   : > { %504 = vmatpush.bf16.msra.mxu2 %v656_v5  ;;  %517 = vmatpush.bf16.msra.mxu3 %v660_v12  ;;  %v538_v20 = vperm.slane %v1342_v3, 1  ;;  %v539_v6 = vperm.slane %v1342_v3, 2  ;;  %v540_v11 = vperm.slane %v1342_v3, 3  ;;  %v537_v12 = vperm.slane %v1342_v3, 0 }
  0xfa   : > { %v541_v8 = vrot.slane %v538_v20, 6  ;;  %v542_v9 = vrot.slane %v539_v6, 4 }
  0xfb   : > { %479 = vmatpush.bf16.msra.mxu0 %v632_v21  ;;  %492 = vmatpush.bf16.msra.mxu1 %v636_v14  ;;  %v543_v21 = vrot.slane %v540_v11, 2 }
  0xfc   : > { %505 = vmatpush.bf16.msra.mxu2 %v640_v10  ;;  %518 = vmatpush.bf16.msra.mxu3 %v644_v17  ;;  %v544_v14 = vsel %vm214_vm1, %v537_v12, %v541_v8 }
  0xfd   : > { %v545_v24 = vsel %vm216_vm3, %v542_v9, %v543_v21 }
  0xfe   : > { %480 = vmatmul.bf16.vlgmr.msra.gmra.mxu0 %v311_v1  ;;  %493 = vmatmul.bf16.vlgmr.msra.gmra.mxu1 %v311_v1 }
  0xff   : > { %506 = vmatmul.bf16.vlgmr.msra.gmra.mxu2 %v311_v1  ;;  %519 = vmatmul.bf16.vlgmr.msra.gmra.mxu3 %v311_v1  ;;  %v310_v1 = vld [vmem:[%s309_s11] sm:$0xff] }
 0x17b   : > { %v481_v2 = vpop.f32.mrf.mxu0  ;;  %v494_v5 = vpop.f32.mrf.mxu1 }
 0x17c   : > { %v528_v16 = vrot.slane %v494_v5, 6  ;;  %v546_v5 = vsel %vm218_vm5, %v544_v14, %v545_v24 }
 0x17e   : > { %v531_v19 = vsel %vm214_vm1, %v481_v2, %v528_v16 }
 0x182   : > { %v507_v15 = vpop.f32.mrf.mxu2  ;;  %v520_v13 = vpop.f32.mrf.mxu3 }
 0x183   : > { %v529_v23 = vrot.slane %v507_v15, 4  ;;  %v530_v10 = vrot.slane %v520_v13, 2  ;;  %v483_v4 = vpop.f32.mrf.mxu0  ;;  %v496_v17 = vpop.f32.mrf.mxu1 }
 0x185   : > { %v532_v0 = vsel %vm216_vm3, %v529_v23, %v530_v10 }
 0x186   : > { %v533_v20 = vsel %vm218_vm5, %v531_v19, %v532_v0 }
 0x187   : > { %v535_v6 = vadd.f32 %v533_v20, %v310_v1 }
 0x189   : > { %v548_v11 = vadd.f32 %v546_v5, %v535_v6 }
 0x18a   : > { %v509_v3 = vpop.f32.mrf.mxu2  ;;  %v522_v12 = vpop.f32.mrf.mxu3 }
 0x18b   : > { %v549_v8 = vmul.f32 0.5, %v548_v11  ;;  %v554_v2 = vrot.slane %v548_v11, 2  ;;  %v563_v15 = vrot.slane %v548_v11, 6  ;;  %v560_v9 = vrot.slane %v548_v11, 4 }
 0x18d   : > { %827 = vtanh.f32 %v549_v8  ;;  %v556_v16 = vmul.f32 0.5, %v554_v2  ;;  %v565_v21 = vmul.f32 0.5, %v563_v15 }
 0x18f   : > { %829 = vtanh.f32 %v556_v16 }
 0x190   : > { %831 = vtanh.f32 %v560_v9 }
 0x191   : > { %833 = vtanh.f32 %v565_v21 }
 0x193   : > { %v828_v13 = vpop.eup %827 }
 0x194   : > { %v551_v4 = vmul.f32 0.5, %v828_v13 }
 0x195   : > { %v830_v23 = vpop.eup %829 }
 0x196   : > { %v552_v10 = vadd.f32 0.5, %v551_v4  ;;  %v558_v0 = vmul.f32 0.5, %v830_v23  ;;  %v832_v19 = vpop.eup %831 }
 0x197   : > { %v834_v17 = vpop.eup %833 }
 0x198   : > { %v559_v14 = vadd.f32 0.5, %v558_v0  ;;  %v570_v24 = vmul.f32 %v832_v19, %v552_v10  ;;  %v567_v1 = vmul.f32 0.5, %v834_v17 }
 0x19a   : > { %v569_v3 = vmul.f32 %v979_v7, %v559_v14  ;;  %v568_v20 = vadd.f32 0.5, %v567_v1 }
 0x19c   : > { %v571_v7 = vadd.f32 %v570_v24, %v569_v3  }
 0x19e   : > { %835 = vtanh.f32 %v571_v7 }
 0x1a3   :  { %303 = sbr.rel (!%p301_p0) target bundleno = 221 (0xdd), region = 67 }
 0x1a4   : > { %v836_v5 = vpop.eup %835 }
 0x1a5   : > { %v573_v6 = vmul.f32 %v836_v5, %v568_v20  }
 0x1a7   : > { %v1343_v8 = vmov %v573_v6  ;;  %574 = vst [vmem:[#allocation11] sm:$0x3] (%p301_p0), %v573_v6 }
 0x1a8   :  { %585 = dma.vmem_to_hbm [thread:$0]  %s581_s16, 32, %s583_s14, [#allocation5]  }
 0x1a9   :  { %975 = dma.done.wait [#allocation5], 32  }
 0x1aa   :  { %976 = vsyncadd [#allocation5], 4294967264 }
 0x1ab   :  { %590 = vsyncpa [#allocation4], 1 }
 0x1ac   :  { %591 = vsyncpa [#allocation7], 1 }
 0x1ad   :  { %592 = vsyncpa [#allocation10], 1 }
 0x1ae   :  { %593 = vsyncpa [#allocation5], 1 }

</bundles_post_ra>
